<compile_context>
chip_gen: v7x
topology: tpu7x:2x2x1
jax: 0.10.0
libtpu: 0.0.40
codegen_flags: <defaults>
</compile_context>

<pallas_src>
import functools
import math

import jax
import jax.numpy as jnp
from jax.experimental import pallas as pl
from jax.experimental.pallas import tpu as pltpu


LN_EPS = 1e-5  # torch.nn.LayerNorm default


def _round_up(x, m):
    return ((x + m - 1) // m) * m


def _pack_factor(P, hidden, max_r=8):
    """Smallest R with R*P and R*hidden multiples of 128 (capped); else 1."""
    r_p = 128 // math.gcd(128, P)
    r_h = 128 // math.gcd(128, hidden)
    r = (r_p * r_h) // math.gcd(r_p, r_h)  # lcm
    return r if r <= max_r else 1


def _patch_embed_kernel(xp_ref, w_ref, b_ref, gb_ref, avg_ref, out_ref):
    """Fused conv-projection (+ per-token mean) + LayerNorm, lane-packed.

    xp_ref : (TILE, Kp)      R tokens packed per 128-lane row (Kp = R*P)
    w_ref  : (Kp, 2*Hp)      [block-diag conv weight | its mean-fold]  (Hp = R*hidden)
    b_ref  : (1, 2*Hp)       [conv bias tiled R times | per-token bias mean]
    gb_ref : (2, Hp)         row 0: LN gamma (tiled), row 1: LN beta (tiled)
    avg_ref: (Hp, Hp)        block-diag per-token averaging matrix (for variance)
    out_ref: (TILE, Hp)
    """
    hp = out_ref.shape[-1]
    x = xp_ref[...]

    # One MXU matmul produces both the projection y and its per-token mean.
    ym = jnp.dot(x, w_ref[...], preferred_element_type=jnp.float32) + b_ref[...]
    y, mean = ym[:, :hp], ym[:, hp:]          # 128-lane-aligned slices, no relayout
    yc = y - mean

    # Per-token (segment-wise) biased variance via a block-diagonal averaging
    # matmul: keeps everything in the lane-dense (TILE, Hp) layout.
    var = jnp.dot(yc * yc, avg_ref[...], preferred_element_type=jnp.float32)
    y_norm = yc * jax.lax.rsqrt(var + LN_EPS)

    out_ref[...] = (y_norm * gb_ref[0:1, :] + gb_ref[1:2, :]).astype(out_ref.dtype)


@functools.partial(jax.jit, static_argnames=("patch_size", "hidden_size", "tile_rows"))
def video_patch_embedding_v2(x, conv_weight, conv_bias, ln_gamma, ln_beta,
                             *, patch_size, hidden_size, tile_rows=1024):
    """Forward of VideoPatchEmbeddingV2 (conv=True).

    x           : (B, F, 1, H, W)
    conv_weight : (hidden, 1, pf, ph, pw)
    conv_bias   : (hidden,)
    ln_gamma    : (hidden,)
    ln_beta     : (hidden,)
    returns     : (B, N, hidden) with N = (F/pf)*(H/ph)*(W/pw)
    """
    pf, ph, pw = patch_size
    B, F, C, H, W = x.shape
    assert C == 1, "Conv3d has in_channels=1"
    nF, nH, nW = F // pf, H // ph, W // pw
    N = nF * nH * nW
    P = pf * ph * pw
    M = B * N
    dt = x.dtype

    # Packing factor: R tokens per 128-lane row (R*P and R*hidden multiples of 128
    # when possible; R=1 fallback stays correct, just not lane-dense).
    R = _pack_factor(P, hidden_size)
    Kp, Hp = R * P, R * hidden_size

    # ---- patchify: token order (f,h,w), voxel order (kf,kh,kw) = Conv3d layout.
    # With allow_input_fusion below, XLA is free to fuse this transpose (and the
    # tiny pad) into the kernel's input DMA instead of materializing it in HBM.
    xs = x.reshape(B, nF, pf, nH, ph, nW, pw)            # C==1 squeezed, free
    xs = xs.transpose(0, 1, 3, 5, 2, 4, 6)               # (B,nF,nH,nW,pf,ph,pw)
    patches = xs.reshape(M, P)                           # (M, P)

    # Pack R tokens per lane row.  Only a tiny (< R rows) pad when M % R != 0;
    # raggedness vs. the tile is left to Pallas's masked boundary blocks.
    M_pad = _round_up(M, R)
    if M_pad != M:
        patches = jnp.pad(patches, ((0, M_pad - M), (0, 0)))
    rows = M_pad // R
    xp = patches.reshape(rows, Kp)                       # free reshape, lane-dense

    # ---- tiling: cap tile so grid >= 2 when rows allow it (both v7x TCs busy),
    # dtype-dependent sublane rounding, default size safe for v5e scoped VMEM.
    sub = max(8, 32 // jnp.dtype(dt).itemsize)           # 8 (f32) / 16 (bf16)
    tile = min(tile_rows, _round_up(-(-rows // 2), sub))
    tile = max(sub, (tile // sub) * sub)
    grid = -(-rows // tile)

    # ---- packed parameters (tiny; built once per shape under jit, all f32).
    w2d = conv_weight.reshape(hidden_size, P).T.astype(jnp.float32)    # (P, hidden)
    eye_r = jnp.eye(R, dtype=jnp.float32)
    w_blk = jnp.kron(eye_r, w2d)                                       # (Kp, Hp)
    avg = jnp.kron(eye_r, jnp.full((hidden_size, hidden_size),
                                   1.0 / hidden_size, jnp.float32))    # (Hp, Hp)
    w_ext = jnp.concatenate([w_blk, w_blk @ avg], axis=1)              # (Kp, 2*Hp)
    b_row = jnp.tile(conv_bias.astype(jnp.float32), R).reshape(1, Hp)
    b_ext = jnp.concatenate([b_row, b_row @ avg], axis=1)              # (1, 2*Hp)
    gb = jnp.stack([jnp.tile(ln_gamma.astype(jnp.float32), R),
                    jnp.tile(ln_beta.astype(jnp.float32), R)])         # (2, Hp)

    out = pl.pallas_call(
        _patch_embed_kernel,
        out_shape=jax.ShapeDtypeStruct((rows, Hp), dt),
        grid=(grid,),
        in_specs=[
            pl.BlockSpec((tile, Kp), lambda i: (i, 0)),
            pl.BlockSpec((Kp, 2 * Hp), lambda i: (0, 0)),
            pl.BlockSpec((1, 2 * Hp), lambda i: (0, 0)),
            pl.BlockSpec((2, Hp), lambda i: (0, 0)),
            pl.BlockSpec((Hp, Hp), lambda i: (0, 0)),
        ],
        out_specs=pl.BlockSpec((tile, Hp), lambda i: (i, 0)),
        compiler_params=pltpu.CompilerParams(
            dimension_semantics=("parallel",),
            # Let XLA fuse the patchify transpose/pad producer into the
            # activation operand (no-op if it declines to fuse).
            allow_input_fusion=[True, False, False, False, False],
        ),
    )(xp, w_ext, b_ext, gb, avg)

    out = out.reshape(M_pad, hidden_size)[:M]            # drop the tiny tail pad
    return out.reshape(B, N, hidden_size)


def _reference(x, conv_weight, conv_bias, ln_gamma, ln_beta, patch_size, hidden_size):
    """Pure-JAX reference (same math as the PyTorch module)."""
    pf, ph, pw = patch_size
    B, F, C, H, W = x.shape
    nF, nH, nW = F // pf, H // ph, W // pw
    N = nF * nH * nW
    P = pf * ph * pw
    xs = x.reshape(B, nF, pf, nH, ph, nW, pw)
    xs = xs.transpose(0, 1, 3, 5, 2, 4, 6).reshape(B, N, P)
    w2d = conv_weight.reshape(hidden_size, P).T
    y = xs @ w2d + conv_bias[None, None, :]
    mean = jnp.mean(y, axis=-1, keepdims=True)
    var = jnp.mean((y - mean) ** 2, axis=-1, keepdims=True)
    yn = (y - mean) / jnp.sqrt(var + LN_EPS)
    return yn * ln_gamma + ln_beta


if __name__ == "__main__":
    # Shapes consistent with the module's forward:
    # patch_size=(2,4,4), hidden=32, x: (B=2, F=4, C=1, H=16, W=16)
    patch_size = (2, 4, 4)
    hidden_size = 32
    B, F, C, H, W = 2, 4, 1, 16, 16
    P = patch_size[0] * patch_size[1] * patch_size[2]

    key = jax.random.PRNGKey(0)
    kx, kw, kb, kg, kbeta = jax.random.split(key, 5)

    x = jax.random.normal(kx, (B, F, C, H, W), dtype=jnp.float32)
    conv_weight = jax.random.normal(kw, (hidden_size, 1, *patch_size),
                                    dtype=jnp.float32) * (1.0 / P) ** 0.5
    conv_bias = jax.random.normal(kb, (hidden_size,), dtype=jnp.float32) * 0.01
    ln_gamma = 1.0 + 0.1 * jax.random.normal(kg, (hidden_size,), dtype=jnp.float32)
    ln_beta = 0.1 * jax.random.normal(kbeta, (hidden_size,), dtype=jnp.float32)

    out = video_patch_embedding_v2(
        x, conv_weight, conv_bias, ln_gamma, ln_beta,
        patch_size=patch_size, hidden_size=hidden_size)
    out = jax.block_until_ready(out)

    ref = _reference(x, conv_weight, conv_bias, ln_gamma, ln_beta, patch_size, hidden_size)
    assert out.shape == (B, (F // 2) * (H // 4) * (W // 4), hidden_size)
    # MXU default precision rounds f32 operands to bf16 for the projection /
    # LN-stat matmuls -> a few e-3 error vs the pure-f32 reference.
    assert jnp.allclose(out, ref, atol=2e-2, rtol=2e-2), \
        float(jnp.max(jnp.abs(out - ref)))

    # Ragged case: N=15 tokens (not a multiple of the pack factor R or the tile),
    # exercising the tiny-pad + masked boundary-block path (H=12, W=20).
    x2 = jax.random.normal(jax.random.PRNGKey(1), (1, 2, 1, 12, 20), dtype=jnp.float32)
    out2 = video_patch_embedding_v2(
        x2, conv_weight, conv_bias, ln_gamma, ln_beta,
        patch_size=patch_size, hidden_size=hidden_size)
    out2 = jax.block_until_ready(out2)
    ref2 = _reference(x2, conv_weight, conv_bias, ln_gamma, ln_beta, patch_size, hidden_size)
    assert out2.shape == (1, 1 * 3 * 5, hidden_size)
    assert jnp.allclose(out2, ref2, atol=2e-2, rtol=2e-2), \
        float(jnp.max(jnp.abs(out2 - ref2)))

    print("KERNEL_OK")
</pallas_src>

<mosaic_0001>
module attributes {stable_mosaic.version = 11 : i64} {
  func.func @_patch_embed_kernel(%arg0: i32, %arg1: memref<8x128xf32, #tpu.memory_space<vmem>>, %arg2: memref<128x256xf32, #tpu.memory_space<vmem>>, %arg3: memref<1x256xf32, #tpu.memory_space<vmem>>, %arg4: memref<2x128xf32, #tpu.memory_space<vmem>>, %arg5: memref<128x128xf32, #tpu.memory_space<vmem>>, %arg6: memref<8x128xf32, #tpu.memory_space<vmem>>) attributes {dimension_semantics = [#tpu.dimension_semantics<parallel>], iteration_bounds = array<i64: 2>, scalar_prefetch = 0 : i64, scratch_operands = 0 : i64, tpu.core_type = #tpu.core_type<tc>, window_params = [{transform_indices = @transform_0, window_bounds = array<i64: 8, 128>}, {pipeline_mode = #tpu.pipeline_mode<synchronous>, transform_indices = @transform_1, window_bounds = array<i64: 128, 256>}, {pipeline_mode = #tpu.pipeline_mode<synchronous>, transform_indices = @transform_2, window_bounds = array<i64: 1, 256>}, {pipeline_mode = #tpu.pipeline_mode<synchronous>, transform_indices = @transform_3, window_bounds = array<i64: 2, 128>}, {pipeline_mode = #tpu.pipeline_mode<synchronous>, transform_indices = @transform_4, window_bounds = array<i64: 128, 128>}, {transform_indices = @transform_5, window_bounds = array<i64: 8, 128>}]} {
    %c0 = arith.constant 0 : index
    %c0_0 = arith.constant 0 : index
    %0 = vector.load %arg1[%c0, %c0_0] : memref<8x128xf32, #tpu.memory_space<vmem>>, vector<8x128xf32>
    %c0_1 = arith.constant 0 : index
    %c0_2 = arith.constant 0 : index
    %1 = vector.load %arg2[%c0_1, %c0_2] : memref<128x256xf32, #tpu.memory_space<vmem>>, vector<128x256xf32>
    %cst = arith.constant dense<0.000000e+00> : vector<8x256xf32>
    %2 = tpu.matmul %0, %1, %cst {dimension_numbers = #tpu.dot_dimension_numbers<[1], [0], [0], [1], [0, 0, 1, 1], [], []>} : vector<8x128xf32>, vector<128x256xf32>, vector<8x256xf32> -> vector<8x256xf32>
    %c0_3 = arith.constant 0 : index
    %c0_4 = arith.constant 0 : index
    %3 = vector.load %arg3[%c0_3, %c0_4] : memref<1x256xf32, #tpu.memory_space<vmem>>, vector<1x256xf32>
    %4 = vector.broadcast %3 : vector<1x256xf32> to vector<8x256xf32>
    %5 = arith.addf %2, %4 : vector<8x256xf32>
    %6 = vector.extract_strided_slice %5 {offsets = [0, 0], sizes = [8, 128], strides = [1, 1]} : vector<8x256xf32> to vector<8x128xf32>
    %7 = vector.extract_strided_slice %5 {offsets = [0, 128], sizes = [8, 128], strides = [1, 1]} : vector<8x256xf32> to vector<8x128xf32>
    %8 = arith.subf %6, %7 : vector<8x128xf32>
    %9 = arith.mulf %8, %8 : vector<8x128xf32>
    %c0_5 = arith.constant 0 : index
    %c0_6 = arith.constant 0 : index
    %10 = vector.load %arg5[%c0_5, %c0_6] : memref<128x128xf32, #tpu.memory_space<vmem>>, vector<128x128xf32>
    %cst_7 = arith.constant dense<0.000000e+00> : vector<8x128xf32>
    %11 = tpu.matmul %9, %10, %cst_7 {dimension_numbers = #tpu.dot_dimension_numbers<[1], [0], [0], [1], [0, 0, 1, 1], [], []>} : vector<8x128xf32>, vector<128x128xf32>, vector<8x128xf32> -> vector<8x128xf32>
    %cst_8 = arith.constant 9.99999974E-6 : f32
    %12 = vector.broadcast %cst_8 : f32 to vector<8x128xf32>
    %13 = arith.addf %11, %12 : vector<8x128xf32>
    %14 = math.rsqrt %13 : vector<8x128xf32>
    %15 = arith.mulf %8, %14 : vector<8x128xf32>
    %c0_9 = arith.constant 0 : index
    %c0_10 = arith.constant 0 : index
    %16 = vector.load %arg4[%c0_9, %c0_10] : memref<2x128xf32, #tpu.memory_space<vmem>>, vector<1x128xf32>
    %17 = vector.broadcast %16 : vector<1x128xf32> to vector<8x128xf32>
    %18 = arith.mulf %15, %17 : vector<8x128xf32>
    %c1 = arith.constant 1 : index
    %c0_11 = arith.constant 0 : index
    %19 = vector.load %arg4[%c1, %c0_11] : memref<2x128xf32, #tpu.memory_space<vmem>>, vector<1x128xf32>
    %20 = vector.broadcast %19 : vector<1x128xf32> to vector<8x128xf32>
    %21 = arith.addf %18, %20 : vector<8x128xf32>
    %c0_12 = arith.constant 0 : index
    %c0_13 = arith.constant 0 : index
    %22 = vector.load %arg6[%c0_12, %c0_13] : memref<8x128xf32, #tpu.memory_space<vmem>>, vector<8x128xf32>
    tpu.vector_store %arg6[%c0_12, %c0_13], %21 {strides = array<i32>} : memref<8x128xf32, #tpu.memory_space<vmem>>, vector<8x128xf32>,
    return
  }
  func.func @transform_0(%arg0: i32) -> (i32, i32) {
    %c0_i32 = arith.constant 0 : i32
    %c0_i32_0 = arith.constant 0 : i32
    return %arg0, %c0_i32 : i32, i32
  }
  func.func @transform_1(%arg0: i32) -> (i32, i32) {
    %c0_i32 = arith.constant 0 : i32
    %c0_i32_0 = arith.constant 0 : i32
    %c0_i32_1 = arith.constant 0 : i32
    return %c0_i32, %c0_i32_0 : i32, i32
  }
  func.func @transform_2(%arg0: i32) -> (i32, i32) {
    %c0_i32 = arith.constant 0 : i32
    %c0_i32_0 = arith.constant 0 : i32
    %c0_i32_1 = arith.constant 0 : i32
    return %c0_i32, %c0_i32_0 : i32, i32
  }
  func.func @transform_3(%arg0: i32) -> (i32, i32) {
    %c0_i32 = arith.constant 0 : i32
    %c0_i32_0 = arith.constant 0 : i32
    %c0_i32_1 = arith.constant 0 : i32
    return %c0_i32, %c0_i32_0 : i32, i32
  }
  func.func @transform_4(%arg0: i32) -> (i32, i32) {
    %c0_i32 = arith.constant 0 : i32
    %c0_i32_0 = arith.constant 0 : i32
    %c0_i32_1 = arith.constant 0 : i32
    return %c0_i32, %c0_i32_0 : i32, i32
  }
  func.func @transform_5(%arg0: i32) -> (i32, i32) {
    %c0_i32 = arith.constant 0 : i32
    %c0_i32_0 = arith.constant 0 : i32
    return %arg0, %c0_i32 : i32, i32
  }
}

</mosaic_0001>

<bundles_post_ra>
// kernel: tile.18
= control target key start
LH: loop header
LB: loop body
LE: loop exit
PB: predicated region body
PF: predicated region fallthrough
CT: control target
= control target key end

     0   :  { %s22_s0 = inlined_call_operand.vmem [shape: f32[32], index: 0, kind: input, shape index: {}]   ;;  %s23_s1 = inlined_call_operand.vmem [shape: f32[4,32], index: 1, kind: output, shape index: {}]  }
   0x1   :  { %v4_v0 = vld [vmem:[%s22_s0] ss:$0 sm:$0xff] }
   0x2   :  { %5 = vst [vmem:[%s23_s1] sm:$0xf] %v4_v0 }

// kernel: tile.19
= control target key start
LH: loop header
LB: loop body
LE: loop exit
PB: predicated region body
PF: predicated region fallthrough
CT: control target
= control target key end

     0   :  { %vm7_vm0 = vcmask 261120   ;;  %s37_s8 = smov 32   ;;  %s38_s9 = smov 64   ;;  %vm13_vm1 = vcmask 1048320   ;;  %vm19_vm2 = vcmask 785920   ;;  %vm25_vm3 = vcmask 523520   ;;  %s55_s0 = inlined_call_operand.vmem [shape: f32[4,32], index: 0, kind: input, shape index: {}]   ;;  %s56_s1 = inlined_call_operand.vmem [shape: f32[1,128], index: 1, kind: output, shape index: {}]  }
   0x1   :  { %v4_v0 = vld [vmem:[%s55_s0] sm:$0xf]  ;;  %s36_s0 = smov 96  }
   0x2   :  { %5 = vst [vmem:[#allocation1] sm:$0xf] %v4_v0 }
   0x9   :  { %v10_v1 = vld [vmem:[#allocation1 + $0x3] sm:$0x1]   ;;  %v22_v2 = vld [vmem:[#allocation1 + $0x1] sm:$0x1]   ;;  %v6_v3 = vld [vmem:[#allocation1] sm:$0x1]  }
   0xa   :  { %11 = vrot.lane.b32.xlu0 %v10_v1, %s36_s0  ;;  %23 = vrot.lane.b32.xlu1 %v22_v2, %s37_s8  ;;  %v16_v4 = vld [vmem:[#allocation1 + $0x2] sm:$0x1]   ;;  %8 = vst.msk [vmem:[#allocation0] sm:$0x1] %vm7_vm0, %v6_v3  }
   0xe   :  { %17 = vrot.lane.b32.xlu0 %v16_v4, %s38_s9 }
  0x7c   :  { %v12_v5 = vpop.permute.xlu0 %11   ;;  %v24_v6 = vpop.permute.xlu1 %23  }
  0x7d   :  { %14 = vst.msk [vmem:[#allocation0] sm:$0x1] %vm13_vm1, %v12_v5  }
  0x80   :  { %v18_v7 = vpop.permute.xlu0 %17  }
  0x81   :  { %20 = vst.msk [vmem:[#allocation0] sm:$0x1] %vm19_vm2, %v18_v7  }
  0x82   :  { %26 = vst.msk [vmem:[#allocation0] sm:$0x1] %vm25_vm3, %v24_v6  }
  0x89   :  { %v30_v8 = vld [vmem:[#allocation0] sm:$0x1] }
  0x8a   :  { %32 = vst [vmem:[%s56_s1] sm:$0x1] %v30_v8 }

// kernel: video_patch_embedding_v2.1
= control target key start
LH: loop header
LB: loop body
LE: loop exit
PB: predicated region body
PF: predicated region fallthrough
CT: control target
= control target key end

     0   :  { %s665_s18 = smov 0   ;;  %s862_s0 = inlined_call_operand.vmem [shape: f32[16,128], index: 0, kind: input, shape index: {}]   ;;  %s863_s1 = inlined_call_operand.vmem [shape: f32[128,256], index: 1, kind: input, shape index: {}]   ;;  %s864_s2 = inlined_call_operand.vmem [shape: f32[1,256], index: 2, kind: input, shape index: {}]   ;;  %s865_s3 = inlined_call_operand.vmem [shape: f32[2,128], index: 3, kind: input, shape index: {}]   ;;  %s866_s4 = inlined_call_operand.vmem [shape: f32[128,128], index: 4, kind: input, shape index: {}]   ;;  %s867_s5 = inlined_call_operand.vmem [shape: f32[16,128], index: 5, kind: output, shape index: {}]  }
   0x1 LB: > { %s492_s19 = sadd.s32 4294967295, %s630_s18   ;;  %p496_p0 = scmp.ge.s32.totalorder %s630_s18, 1  ;;  %s630_s18 = sphi %s665_s18, %s15_s18  }
   0x2   : > { %p186_p1 = scmp.lt.s32.totalorder %s630_s18, 3 }
   0x4   : > { %p187_p2 = pnand %p496_p0, %p186_p1 }
   0x5   : > { %v222_v0 = vld [vmem:[%s863_s1 + $0x8] sm:$0xff] (!%p187_p2)  ;;  %v224_v1 = vld [vmem:[%s863_s1 + $0x18] sm:$0xff] (!%p187_p2)  ;;  %v221_v2 = vld [vmem:[%s863_s1] sm:$0xff] (!%p187_p2)  ;;  %v632_v7 = vmov (!%p187_p2), 0.0   ;;  %v633_v8 = vmov (!%p187_p2), 0.0|0.0   ;;  %p774_p3 = scmp.lt.s32.totalorder (!%p187_p2), %s492_s19, 1 }
   0x6   : > { %190 = sbr.rel (%p187_p2) target bundleno = 491 (0x1eb), region = 40  ;;  %v555_v3 = vpack.c.bf16 (!%p187_p2), %v224_v1, %v222_v0  ;;  %v223_v4 = vld [vmem:[%s863_s1 + $0x10] sm:$0xff] (!%p187_p2)  ;;  %v226_v5 = vld [vmem:[%s863_s1 + $0x28] sm:$0xff] (!%p187_p2)  ;;  %v228_v6 = vld [vmem:[%s863_s1 + $0x38] sm:$0xff] (!%p187_p2)  ;;  %329 = vmatprep.mubr.f32.mxu0 (!%p187_p2), %v632_v7  ;;  %587 = vmatprep.subr.bf16.mxu1 (!%p187_p2), %v633_v8  ;;  %vm634_vm0 = vmmov (!%p187_p2), 0  }
   0x7   : > { %v557_v9 = vpack.c.bf16 (!%p187_p2), %v223_v4, %v221_v2  ;;  %v559_v10 = vpack.c.bf16 (!%p187_p2), %v228_v6, %v226_v5  ;;  %v225_v11 = vld [vmem:[%s863_s1 + $0x20] sm:$0xff] (!%p187_p2)  ;;  %v227_v12 = vld [vmem:[%s863_s1 + $0x30] sm:$0xff] (!%p187_p2)  ;;  %v230_v13 = vld [vmem:[%s863_s1 + $0x48] sm:$0xff] (!%p187_p2)  ;;  %552 = vmatprep.mubr.msk.f32.mxu1 (!%p187_p2), %vm634_vm0, %v632_v7 }
   0x8   : > { %556 = vmatprep.subr.bf16.mxu0 (!%p187_p2), %v555_v3  ;;  %v232_v14 = vld [vmem:[%s863_s1 + $0x58] sm:$0xff] (!%p187_p2)  ;;  %v561_v15 = vpack.c.bf16 (!%p187_p2), %v227_v12, %v225_v11  ;;  %v229_v17 = vld [vmem:[%s863_s1 + $0x40] sm:$0xff] (!%p187_p2)  ;;  %v231_v18 = vld [vmem:[%s863_s1 + $0x50] sm:$0xff] (!%p187_p2) }
   0x9   : > { %558 = vmatpush1.bf16.msra.mxu0 (!%p187_p2), %v557_v9  ;;  %v563_v16 = vpack.c.bf16 (!%p187_p2), %v232_v14, %v230_v13  ;;  %v234_v19 = vld [vmem:[%s863_s1 + $0x68] sm:$0xff] (!%p187_p2)  ;;  %v236_v20 = vld [vmem:[%s863_s1 + $0x78] sm:$0xff] (!%p187_p2)  ;;  %v565_v21 = vpack.c.bf16 (!%p187_p2), %v231_v18, %v229_v17  ;;  %v233_v23 = vld [vmem:[%s863_s1 + $0x60] sm:$0xff] (!%p187_p2)  ;;  %v255_v13 = vlaneseq (!%p187_p2) }
   0xa   : > { %560 = vmatprep.subr.bf16.mxu0 (!%p187_p2), %v559_v10  ;;  %v567_v22 = vpack.c.bf16 (!%p187_p2), %v236_v20, %v234_v19  ;;  %v235_v24 = vld [vmem:[%s863_s1 + $0x70] sm:$0xff] (!%p187_p2)  ;;  %v238_v25 = vld [vmem:[%s863_s1 + $0x88] sm:$0xff] (!%p187_p2)  ;;  %v240_v26 = vld [vmem:[%s863_s1 + $0x98] sm:$0xff] (!%p187_p2) }
   0xb   : > { %v338_v27 = vld [vmem:[%s866_s4] sm:$0xff] (!%p187_p2)  ;;  %v339_v28 = vld [vmem:[%s866_s4 + $0x8] sm:$0xff] (!%p187_p2)  ;;  %v340_v29 = vld [vmem:[%s866_s4 + $0x10] sm:$0xff] (!%p187_p2)  ;;  %v569_v30 = vpack.c.bf16 (!%p187_p2), %v235_v24, %v233_v23  ;;  %v571_v33 = vpack.c.bf16 (!%p187_p2), %v240_v26, %v238_v25  ;;  %v256_v14 = vshrl.u32 (!%p187_p2), %v255_v13, 7 }
   0xc   : > { %v588_v31 = vpack.c.bf16 (!%p187_p2), %v339_v28, %v338_v27  ;;  %v341_v32 = vld [vmem:[%s866_s4 + $0x18] sm:$0xff] (!%p187_p2)  ;;  %v237_v34 = vld [vmem:[%s863_s1 + $0x80] sm:$0xff] (!%p187_p2)  ;;  %v239_v35 = vld [vmem:[%s863_s1 + $0x90] sm:$0xff] (!%p187_p2) }
   0xd   : > { %562 = vmatpush1.bf16.msra.mxu0 %v561_v15  ;;  %v242_v36 = vld [vmem:[%s863_s1 + $0xa8] sm:$0xff]  ;;  %v244_v37 = vld [vmem:[%s863_s1 + $0xb8] sm:$0xff]  ;;  %v591_v38 = vpack.c.bf16 %v341_v32, %v340_v29  ;;  %v342_v39 = vld [vmem:[%s866_s4 + $0x20] sm:$0xff]  ;;  %v573_v41 = vpack.c.bf16 %v239_v35, %v237_v34  ;;  %s870_s19 = smov (!%p774_p3, %s492_s19), 1  ;;  %v257_v15 = vsub.s32 0, %v256_v14 }
   0xe   : > { %564 = vmatprep.subr.bf16.mxu0 %v563_v16  ;;  %589 = vmatpush3.bf16.msra.mxu1 %v588_v31  ;;  %v343_v40 = vld [vmem:[%s866_s4 + $0x28] sm:$0xff]  ;;  %v575_v42 = vpack.c.bf16 %v244_v37, %v242_v36  ;;  %v241_v43 = vld [vmem:[%s863_s1 + $0xa0] sm:$0xff]  ;;  %v243_v44 = vld [vmem:[%s863_s1 + $0xb0] sm:$0xff]  ;;  %s497_s11 = sshll.u32 %s870_s19, 3  ;;  %v261_v16 = vsub.s32 1, %v256_v14 }
   0xf   : > { %590 = vmatprep.subr.bf16.mxu1 %v633_v8  ;;  %v246_v45 = vld [vmem:[%s863_s1 + $0xc8] sm:$0xff]  ;;  %v248_v46 = vld [vmem:[%s863_s1 + $0xd8] sm:$0xff]  ;;  %v594_v47 = vpack.c.bf16 %v343_v40, %v342_v39  ;;  %v344_v48 = vld [vmem:[%s866_s4 + $0x30] sm:$0xff]  ;;  %v577_v50 = vpack.c.bf16 %v243_v44, %v241_v43  ;;  %s215_s20 = scalar_lea.vmem %s862_s0, %s497_s11  ;;  %s219_s13 = scalar_lea.vmem %s867_s5, %s497_s11 }
  0x10   : > { %v345_v49 = vld [vmem:[%s866_s4 + $0x38] sm:$0xff]  ;;  %v579_v51 = vpack.c.bf16 %v248_v46, %v246_v45  ;;  %v245_v52 = vld [vmem:[%s863_s1 + $0xc0] sm:$0xff]  ;;  %v247_v53 = vld [vmem:[%s863_s1 + $0xd0] sm:$0xff] }
  0x11   : > { %566 = vmatpush1.bf16.msra.mxu0 %v565_v21  ;;  %v250_v54 = vld [vmem:[%s863_s1 + $0xe8] sm:$0xff]  ;;  %v252_v55 = vld [vmem:[%s863_s1 + $0xf8] sm:$0xff]  ;;  %v597_v56 = vpack.c.bf16 %v345_v49, %v344_v48  ;;  %v346_v57 = vld [vmem:[%s866_s4 + $0x40] sm:$0xff]  ;;  %v581_v59 = vpack.c.bf16 %v247_v53, %v245_v52 }
  0x12   : > { %568 = vmatprep.subr.bf16.mxu0 %v567_v22  ;;  %592 = vmatpush3.bf16.msra.mxu1 %v591_v38  ;;  %v347_v58 = vld [vmem:[%s866_s4 + $0x48] sm:$0xff]  ;;  %v583_v60 = vpack.c.bf16 %v252_v55, %v250_v54  ;;  %v249_v61 = vld [vmem:[%s863_s1 + $0xe0] sm:$0xff]  ;;  %v251_v62 = vld [vmem:[%s863_s1 + $0xf0] sm:$0xff] }
  0x13   : > { %593 = vmatprep.subr.bf16.mxu1 %v633_v8  ;;  %v600_v63 = vpack.c.bf16 %v347_v58, %v346_v57  ;;  %v348_v0 = vld [vmem:[%s866_s4 + $0x50] sm:$0xff]  ;;  %v349_v1 = vld [vmem:[%s866_s4 + $0x58] sm:$0xff]  ;;  %v585_v2 = vpack.c.bf16 %v251_v62, %v249_v61  ;;  %v220_v4 = vld [vmem:[%s215_s20] sm:$0xff] }
  0x14   : > { %v603_v3 = vpack.c.bf16 %v349_v1, %v348_v0  ;;  %v350_v5 = vld [vmem:[%s866_s4 + $0x60] sm:$0xff]  ;;  %v351_v6 = vld [vmem:[%s866_s4 + $0x68] sm:$0xff]  ;;  %v352_v10 = vld [vmem:[%s866_s4 + $0x70] sm:$0xff] }
  0x15   : > { %570 = vmatpush1.bf16.msra.mxu0 %v569_v30  ;;  %v606_v9 = vpack.c.bf16 %v351_v6, %v350_v5  ;;  %v353_v11 = vld [vmem:[%s866_s4 + $0x78] sm:$0xff]  ;;  %v499_v28 = vld [vmem:[%s865_s3] ss:$0 sm:$0xff]  ;;  %v500_v30 = vld [vmem:[%s865_s3 + $0x1] ss:$0 sm:$0xff] }
  0x16   : > { %572 = vmatprep.subr.bf16.mxu0 %v571_v33  ;;  %595 = vmatpush3.bf16.msra.mxu1 %v594_v47  ;;  %v609_v12 = vpack.c.bf16 %v353_v11, %v352_v10 }
  0x17   : > { %596 = vmatprep.subr.bf16.mxu1 %v633_v8 }
  0x19   : > { %574 = vmatpush1.bf16.msra.mxu0 %v573_v41 }
  0x1a   : > { %576 = vmatprep.subr.bf16.mxu0 %v575_v42  ;;  %598 = vmatpush3.bf16.msra.mxu1 %v597_v56 }
  0x1b   : > { %599 = vmatprep.subr.bf16.mxu1 %v633_v8 }
  0x1d   : > { %578 = vmatpush1.bf16.msra.mxu0 %v577_v50 }
  0x1e   : > { %580 = vmatprep.subr.bf16.mxu0 %v579_v51  ;;  %601 = vmatpush3.bf16.msra.mxu1 %v600_v63 }
  0x1f   : > { %602 = vmatprep.subr.bf16.mxu1 %v633_v8 }
  0x21   : > { %582 = vmatpush1.bf16.msra.mxu0 %v581_v59 }
  0x22   : > { %584 = vmatprep.subr.bf16.mxu0 %v583_v60  ;;  %604 = vmatpush3.bf16.msra.mxu1 %v603_v3 }
  0x23   : > { %605 = vmatprep.subr.bf16.mxu1 %v633_v8 }
  0x25   : > { %586 = vmatpush1.bf16.msra.mxu0 %v585_v2 }
  0x26   : > { %607 = vmatpush3.bf16.msra.mxu1 %v606_v9 }
  0x27   : > { %608 = vmatprep.subr.bf16.mxu1 %v633_v8  ;;  %v253_v8 = vld [vmem:[%s864_s2] sm:$0x3] }
  0x28   : > { %330 = vmatmul.mubr.f32.vlgmr.msra.gmra.mrb[0].mxu0 %v220_v4  ;;  %v258_v17 = vrot.slane %v253_v8, %v257_v15  ;;  %v262_v18 = vrot.slane %v253_v8, %v261_v16 }
  0x2a   : > { %610 = vmatpush3.bf16.msra.mxu1 %v609_v12 }
  0xfb   : > { %v331_v19 = vpop.f32.mrb[0].mxu0 }
  0xfc   : > { %v332_v20 = vadd.f32 %v331_v19, %v258_v17  ;;  %v333_v21 = vpop.f32.mrb[1].mxu0 }
  0xfd   : > { %v334_v22 = vadd.f32 %v333_v21, %v262_v18 }
  0xff   : > { %v336_v23 = vsub.f32 %v332_v20, %v334_v22 }
 0x101   : > { %v337_v24 = vmul.f32 %v336_v23, %v336_v23 }
 0x103   : > { %553 = vmatmul.mubr.f32.vlgmr.msra.gmra.mrb[0].mxu1 %v337_v24 }
 0x1d6   : > { %v420_v25 = vpop.f32.mrb[0].mxu1 }
 0x1d7   : > { %v421_v7 = vadd.f32 1e-05, %v420_v25  ;;  %v554_v26 = vpop.f32.mrb[1].mxu1 }
 0x1d9   : > { %622 = vrsqrt.f32 %v421_v7 }
 0x1e3   : > { %v623_v27 = vpop.eup %622 }
 0x1e4   : > { %v425_v29 = vmul.f32 %v623_v27, %v336_v23 }
 0x1e6   : > { %v431_v31 = vmul.f32 %v499_v28, %v425_v29 }
 0x1e8   : > { %v437_v32 = vadd.f32 %v500_v30, %v431_v31 }
 0x1ea   : > { %438 = vst [vmem:[%s219_s13] sm:$0xff] %v437_v32 }
 0x1eb PF: > { %s15_s18 = sadd.s32 1, %s630_s18  }
 0x1ec   : > { %p12_p4 = scmp.ge.s32.totalorder %s15_s18, 4  }
 0x1ee   :  { %14 = sbr.rel (!%p12_p4) target bundleno = 1 (0x1), region = 70 }

</bundles_post_ra>
